<compile_context>
chip_gen: v6e
topology: v6e:2x2x1
jax: 0.10.0
libtpu: 0.0.40
codegen_flags: <defaults>
</compile_context>

<pallas_src>
import jax
import jax.numpy as jnp
from jax.experimental import pallas as pl
from jax.experimental.pallas import tpu as pltpu


def _round_up(x, m):
    return (x + m - 1) // m * m


def _pick_tile_rows(c, budget_bytes=8 << 20):
    # Per-row bytes across all pipelined streams (logits + labels + step/dur
    # pred/true), x2 for double buffering.  Budget stays well inside the
    # default scoped-VMEM limit on v5e/v6e/v7x.
    bytes_per_row = 2 * (4 * c + 4 + 16)
    t = budget_bytes // bytes_per_row
    return int(max(128, min(4096, (t // 128) * 128)))


def _loss_kernel(params_ref,   # SMEM (4,)     f32  [w_pitch, w_step, w_dur, 1/N]
                 logits_ref,   # VMEM (T, C)   f32  pitch logits tile
                 labels_ref,   # VMEM (T, 1)   i32  pitch labels tile (-1 = pad)
                 sdp_ref,      # VMEM (2, T)   f32  [step_pred; dur_pred]
                 sdt_ref,      # VMEM (2, T)   f32  [step_true; dur_true]
                 out_ref,      # SMEM (1,)     f32  scalar loss
                 acc_ref):     # SMEM (3,) scratch f32 [ce_sum, step_sum, dur_sum]
    i = pl.program_id(0)

    @pl.when(i == 0)
    def _init():
        acc_ref[0] = jnp.float32(0.0)
        acc_ref[1] = jnp.float32(0.0)
        acc_ref[2] = jnp.float32(0.0)

    logits = logits_ref[...]                                           # (T, C)
    labels = labels_ref[...]                                           # (T, 1)

    # ---- CrossEntropy partial sum: sum over valid rows of (lse - logit[label]) ----
    m = jnp.max(logits, axis=-1, keepdims=True)                        # (T, 1)
    lse = m + jnp.log(jnp.sum(jnp.exp(logits - m), axis=-1,
                              keepdims=True))                          # (T, 1)
    col = jax.lax.broadcasted_iota(jnp.int32, logits.shape, 1)         # (T, C)
    picked = jnp.sum(jnp.where(col == labels, logits, 0.0),
                     axis=-1, keepdims=True)                           # (T, 1)
    valid = labels >= 0                                                # pad rows masked
    acc_ref[0] += jnp.sum(jnp.where(valid, lse - picked, 0.0))

    # ---- mse_with_positive_pressure partial sums (padded lanes are 0 -> add 0) ----
    p = sdp_ref[...]                                                   # (2, T)
    t = sdt_ref[...]                                                   # (2, T)
    contrib = (t - p) ** 2 + 10.0 * jnp.maximum(-p, 0.0)               # (2, T)
    acc_ref[1] += jnp.sum(contrib[0:1, :])                             # step
    acc_ref[2] += jnp.sum(contrib[1:2, :])                             # duration

    @pl.when(i == pl.num_programs(0) - 1)
    def _finalize():
        inv_n = params_ref[3]   # all three losses are means over the same true N
        out_ref[0] = inv_n * (acc_ref[0] * params_ref[0]
                              + acc_ref[1] * params_ref[1]
                              + acc_ref[2] * params_ref[2])


def my_loss(pred, y, weight, *, tile_n=None):
    """pred/y: dicts with 'pitch' (N,C)/(N,), 'step' (N,), 'duration' (N,).
    Returns scalar f32 loss. tile_n (if given) must be a multiple of 128."""
    logits = pred['pitch'].astype(jnp.float32)                         # (N, C)
    n, c = logits.shape
    labels = y['pitch'].astype(jnp.int32).reshape(n, 1)                # (N, 1)
    # Lane-dense packing: (2, N) with N on the lane axis.
    sd_p = jnp.stack([pred['step'].reshape(n).astype(jnp.float32),
                      pred['duration'].reshape(n).astype(jnp.float32)], axis=0)
    sd_t = jnp.stack([y['step'].reshape(n).astype(jnp.float32),
                      y['duration'].reshape(n).astype(jnp.float32)], axis=0)

    if tile_n is None:
        tile_n = _pick_tile_rows(c)
    assert tile_n % 128 == 0

    if n <= tile_n:
        t = _round_up(n, 8)          # single tile; block == full (padded) array
        n_pad = t
    else:
        t = tile_n                   # multi-tile; lane dim is a multiple of 128
        n_pad = _round_up(n, t)
    num_tiles = n_pad // t

    if n_pad != n:
        pad = n_pad - n
        logits = jnp.pad(logits, ((0, pad), (0, 0)))                   # zeros (masked)
        labels = jnp.pad(labels, ((0, pad), (0, 0)), constant_values=-1)
        sd_p = jnp.pad(sd_p, ((0, 0), (0, pad)))                       # zeros -> add 0
        sd_t = jnp.pad(sd_t, ((0, 0), (0, pad)))

    w = jnp.asarray(weight, dtype=jnp.float32).reshape(3)
    params = jnp.concatenate([w, jnp.asarray([1.0 / n], jnp.float32)])  # (4,)

    out = pl.pallas_call(
        _loss_kernel,
        out_shape=jax.ShapeDtypeStruct((1,), jnp.float32),
        grid=(num_tiles,),
        in_specs=[
            pl.BlockSpec(memory_space=pltpu.MemorySpace.SMEM),          # params
            pl.BlockSpec((t, c), lambda i: (i, 0)),                     # logits tile
            pl.BlockSpec((t, 1), lambda i: (i, 0)),                     # labels tile
            pl.BlockSpec((2, t), lambda i: (0, i)),                     # step/dur pred
            pl.BlockSpec((2, t), lambda i: (0, i)),                     # step/dur true
        ],
        out_specs=pl.BlockSpec(memory_space=pltpu.MemorySpace.SMEM),    # scalar loss
        scratch_shapes=[pltpu.SMEM((3,), jnp.float32)],                 # partial sums
        compiler_params=pltpu.CompilerParams(
            dimension_semantics=("arbitrary",)),                        # row reduction
    )(params, logits, labels, sd_p, sd_t)
    return out[0]


def _reference(pred, y, weight):
    logits = pred['pitch'].astype(jnp.float32)
    labels = y['pitch'].astype(jnp.int32)
    logp = jax.nn.log_softmax(logits, axis=-1)
    ce = -jnp.mean(jnp.take_along_axis(logp, labels[:, None], axis=-1))

    def mse_pp(p, t):
        return jnp.mean((t - p) ** 2 + 10.0 * jnp.maximum(-p, 0.0))

    b = mse_pp(pred['step'].reshape(-1), y['step'].reshape(-1))
    cc = mse_pp(pred['duration'].reshape(-1), y['duration'].reshape(-1))
    w = jnp.asarray(weight, jnp.float32)
    return ce * w[0] + b * w[1] + cc * w[2]


if __name__ == "__main__":
    N, C = 200, 128   # 200 note events, 128 pitch classes (small demo shapes)
    key = jax.random.PRNGKey(0)
    k1, k2, k3, k4, k5, k6 = jax.random.split(key, 6)

    pred = {
        'pitch': jax.random.normal(k1, (N, C), jnp.float32),
        'step': jax.random.normal(k2, (N,), jnp.float32),
        'duration': jax.random.normal(k3, (N,), jnp.float32),
    }
    y = {
        'pitch': jax.random.randint(k4, (N,), 0, C, jnp.int32),
        'step': jax.nn.relu(jax.random.normal(k5, (N,), jnp.float32)),
        'duration': jax.nn.relu(jax.random.normal(k6, (N,), jnp.float32)),
    }
    weight = [0.05, 1.0, 1.0]  # deterministic, as passed to MyLoss(weight)

    ref = _reference(pred, y, weight)

    # Multi-tile path: tile_n=128 -> grid of 2 tiles, 56 padded/masked rows.
    loss_tiled = jax.block_until_ready(my_loss(pred, y, weight, tile_n=128))
    # Auto-sized (production) tile -> single tile here.
    loss_default = jax.block_until_ready(my_loss(pred, y, weight))

    assert jnp.allclose(loss_tiled, ref, rtol=1e-5, atol=1e-5), (loss_tiled, ref)
    assert jnp.allclose(loss_default, ref, rtol=1e-5, atol=1e-5), (loss_default, ref)
    print("KERNEL_OK")
</pallas_src>

<mosaic_0001>
module attributes {stable_mosaic.version = 11 : i64} {
  func.func @_loss_kernel(%arg0: i32, %arg1: memref<4xf32, #tpu.memory_space<smem>>, %arg2: memref<128x128xf32, #tpu.memory_space<vmem>>, %arg3: memref<128x1xi32, #tpu.memory_space<vmem>>, %arg4: memref<2x128xf32, #tpu.memory_space<vmem>>, %arg5: memref<2x128xf32, #tpu.memory_space<vmem>>, %arg6: memref<1xf32, #tpu.memory_space<smem>>, %arg7: memref<3xf32, #tpu.memory_space<smem>>) attributes {dimension_semantics = [#tpu.dimension_semantics<arbitrary>], iteration_bounds = array<i64: 2>, scalar_prefetch = 0 : i64, scratch_operands = 1 : i64, tpu.core_type = #tpu.core_type<tc>, window_params = [{transform_indices = @transform_0, window_bounds = array<i64: 4>}, {transform_indices = @transform_1, window_bounds = array<i64: 128, 128>}, {transform_indices = @transform_2, window_bounds = array<i64: 128, 1>}, {transform_indices = @transform_3, window_bounds = array<i64: 2, 128>}, {transform_indices = @transform_4, window_bounds = array<i64: 2, 128>}, {transform_indices = @transform_5, window_bounds = array<i64: 1>}]} {
    %c0_i32 = arith.constant 0 : i32
    %0 = arith.cmpi eq, %arg0, %c0_i32 : i32
    %1 = arith.extui %0 : i1 to i32
    %c0_i32_0 = arith.constant 0 : i32
    %2 = arith.cmpi ne, %1, %c0_i32_0 : i32
    scf.if %2 {
      %cst_24 = arith.constant 0.000000e+00 : f32
      %c0_25 = arith.constant 0 : index
      %63 = memref.load %arg7[%c0_25] : memref<3xf32, #tpu.memory_space<smem>>
      memref.store %cst_24, %arg7[%c0_25] : memref<3xf32, #tpu.memory_space<smem>>
      %cst_26 = arith.constant 0.000000e+00 : f32
      %c1_27 = arith.constant 1 : index
      %64 = memref.load %arg7[%c1_27] : memref<3xf32, #tpu.memory_space<smem>>
      memref.store %cst_26, %arg7[%c1_27] : memref<3xf32, #tpu.memory_space<smem>>
      %cst_28 = arith.constant 0.000000e+00 : f32
      %c2_29 = arith.constant 2 : index
      %65 = memref.load %arg7[%c2_29] : memref<3xf32, #tpu.memory_space<smem>>
      memref.store %cst_28, %arg7[%c2_29] : memref<3xf32, #tpu.memory_space<smem>>
    } else {
    }
    %c0 = arith.constant 0 : index
    %c0_1 = arith.constant 0 : index
    %3 = vector.load %arg2[%c0, %c0_1] : memref<128x128xf32, #tpu.memory_space<vmem>>, vector<128x128xf32>
    %c0_2 = arith.constant 0 : index
    %c0_3 = arith.constant 0 : index
    %4 = vector.load %arg3[%c0_2, %c0_3] : memref<128x1xi32, #tpu.memory_space<vmem>>, vector<128x1xi32>
    %cst = arith.constant dense<0xFF800000> : vector<128xf32>
    %5 = vector.multi_reduction <maximumf>, %3, %cst [1] : vector<128x128xf32> to vector<128xf32>
    %6 = vector.shape_cast %5 : vector<128xf32> to vector<128x1xf32>
    %7 = vector.broadcast %6 : vector<128x1xf32> to vector<128x128xf32>
    %8 = arith.subf %3, %7 : vector<128x128xf32>
    %9 = math.exp %8 : vector<128x128xf32>
    %cst_4 = arith.constant dense<0.000000e+00> : vector<128xf32>
    %10 = vector.multi_reduction <add>, %9, %cst_4 [1] : vector<128x128xf32> to vector<128xf32>
    %11 = vector.shape_cast %10 : vector<128xf32> to vector<128x1xf32>
    %12 = math.log %11 : vector<128x1xf32>
    %13 = arith.addf %6, %12 : vector<128x1xf32>
    %14 = tpu.iota {dimensions = array<i32: 1>} : vector<128x128xi32>
    %15 = vector.broadcast %4 : vector<128x1xi32> to vector<128x128xi32>
    %16 = arith.cmpi eq, %14, %15 : vector<128x128xi32>
    %cst_5 = arith.constant 0.000000e+00 : f32
    %17 = vector.broadcast %cst_5 : f32 to vector<128x128xf32>
    %18 = arith.select %16, %3, %17 : vector<128x128xi1>, vector<128x128xf32>
    %cst_6 = arith.constant dense<0.000000e+00> : vector<128xf32>
    %19 = vector.multi_reduction <add>, %18, %cst_6 [1] : vector<128x128xf32> to vector<128xf32>
    %20 = vector.shape_cast %19 : vector<128xf32> to vector<128x1xf32>
    %c0_i32_7 = arith.constant 0 : i32
    %21 = vector.broadcast %c0_i32_7 : i32 to vector<128x1xi32>
    %22 = arith.cmpi sge, %4, %21 : vector<128x1xi32>
    %c0_8 = arith.constant 0 : index
    %23 = memref.load %arg7[%c0_8] : memref<3xf32, #tpu.memory_space<smem>>
    %24 = arith.subf %13, %20 : vector<128x1xf32>
    %cst_9 = arith.constant 0.000000e+00 : f32
    %25 = vector.broadcast %cst_9 : f32 to vector<128x1xf32>
    %26 = arith.select %22, %24, %25 : vector<128x1xi1>, vector<128x1xf32>
    %27 = vector.shape_cast %26 : vector<128x1xf32> to vector<1x128x1xf32>
    %cst_10 = arith.constant dense<0.000000e+00> : vector<1xf32>
    %28 = vector.multi_reduction <add>, %27, %cst_10 [1, 2] : vector<1x128x1xf32> to vector<1xf32>
    %29 = vector.shape_cast %28 : vector<1xf32> to vector<1x1x1xf32>
    %30 = vector.extract %29[0, 0, 0] : f32 from vector<1x1x1xf32>
    %31 = arith.addf %23, %30 : f32
    %c0_11 = arith.constant 0 : index
    %32 = memref.load %arg7[%c0_11] : memref<3xf32, #tpu.memory_space<smem>>
    memref.store %31, %arg7[%c0_11] : memref<3xf32, #tpu.memory_space<smem>>
    %c0_12 = arith.constant 0 : index
    %c0_13 = arith.constant 0 : index
    %33 = vector.load %arg4[%c0_12, %c0_13] : memref<2x128xf32, #tpu.memory_space<vmem>>, vector<2x128xf32>
    %c0_14 = arith.constant 0 : index
    %c0_15 = arith.constant 0 : index
    %34 = vector.load %arg5[%c0_14, %c0_15] : memref<2x128xf32, #tpu.memory_space<vmem>>, vector<2x128xf32>
    %35 = arith.subf %34, %33 : vector<2x128xf32>
    %36 = arith.mulf %35, %35 : vector<2x128xf32>
    %cst_16 = arith.constant 0.000000e+00 : f32
    %37 = vector.broadcast %cst_16 : f32 to vector<2x128xf32>
    %38 = arith.subf %37, %33 : vector<2x128xf32>
    %cst_17 = arith.constant 0.000000e+00 : f32
    %39 = vector.broadcast %cst_17 : f32 to vector<2x128xf32>
    %40 = arith.maximumf %38, %39 : vector<2x128xf32>
    %cst_18 = arith.constant 1.000000e+01 : f32
    %41 = vector.broadcast %cst_18 : f32 to vector<2x128xf32>
    %42 = arith.mulf %41, %40 : vector<2x128xf32>
    %43 = arith.addf %36, %42 : vector<2x128xf32>
    %c1 = arith.constant 1 : index
    %44 = memref.load %arg7[%c1] : memref<3xf32, #tpu.memory_space<smem>>
    %45 = vector.extract_strided_slice %43 {offsets = [0, 0], sizes = [1, 128], strides = [1, 1]} : vector<2x128xf32> to vector<1x128xf32>
    %46 = vector.shape_cast %45 : vector<1x128xf32> to vector<1x1x128xf32>
    %cst_19 = arith.constant dense<0.000000e+00> : vector<1xf32>
    %47 = vector.multi_reduction <add>, %46, %cst_19 [1, 2] : vector<1x1x128xf32> to vector<1xf32>
    %48 = vector.shape_cast %47 : vector<1xf32> to vector<1x1x1xf32>
    %49 = vector.extract %48[0, 0, 0] : f32 from vector<1x1x1xf32>
    %50 = arith.addf %44, %49 : f32
    %c1_20 = arith.constant 1 : index
    %51 = memref.load %arg7[%c1_20] : memref<3xf32, #tpu.memory_space<smem>>
    memref.store %50, %arg7[%c1_20] : memref<3xf32, #tpu.memory_space<smem>>
    %c2 = arith.constant 2 : index
    %52 = memref.load %arg7[%c2] : memref<3xf32, #tpu.memory_space<smem>>
    %53 = vector.extract_strided_slice %43 {offsets = [1, 0], sizes = [1, 128], strides = [1, 1]} : vector<2x128xf32> to vector<1x128xf32>
    %54 = vector.shape_cast %53 : vector<1x128xf32> to vector<1x1x128xf32>
    %cst_21 = arith.constant dense<0.000000e+00> : vector<1xf32>
    %55 = vector.multi_reduction <add>, %54, %cst_21 [1, 2] : vector<1x1x128xf32> to vector<1xf32>
    %56 = vector.shape_cast %55 : vector<1xf32> to vector<1x1x1xf32>
    %57 = vector.extract %56[0, 0, 0] : f32 from vector<1x1x1xf32>
    %58 = arith.addf %52, %57 : f32
    %c2_22 = arith.constant 2 : index
    %59 = memref.load %arg7[%c2_22] : memref<3xf32, #tpu.memory_space<smem>>
    memref.store %58, %arg7[%c2_22] : memref<3xf32, #tpu.memory_space<smem>>
    %c1_i32 = arith.constant 1 : i32
    %60 = arith.cmpi eq, %arg0, %c1_i32 : i32
    %61 = arith.extui %60 : i1 to i32
    %c0_i32_23 = arith.constant 0 : i32
    %62 = arith.cmpi ne, %61, %c0_i32_23 : i32
    scf.if %62 {
      %c3 = arith.constant 3 : index
      %63 = memref.load %arg1[%c3] : memref<4xf32, #tpu.memory_space<smem>>
      %c0_24 = arith.constant 0 : index
      %64 = memref.load %arg7[%c0_24] : memref<3xf32, #tpu.memory_space<smem>>
      %c0_25 = arith.constant 0 : index
      %65 = memref.load %arg1[%c0_25] : memref<4xf32, #tpu.memory_space<smem>>
      %66 = arith.mulf %64, %65 : f32
      %c1_26 = arith.constant 1 : index
      %67 = memref.load %arg7[%c1_26] : memref<3xf32, #tpu.memory_space<smem>>
      %c1_27 = arith.constant 1 : index
      %68 = memref.load %arg1[%c1_27] : memref<4xf32, #tpu.memory_space<smem>>
      %69 = arith.mulf %67, %68 : f32
      %70 = arith.addf %66, %69 : f32
      %c2_28 = arith.constant 2 : index
      %71 = memref.load %arg7[%c2_28] : memref<3xf32, #tpu.memory_space<smem>>
      %c2_29 = arith.constant 2 : index
      %72 = memref.load %arg1[%c2_29] : memref<4xf32, #tpu.memory_space<smem>>
      %73 = arith.mulf %71, %72 : f32
      %74 = arith.addf %70, %73 : f32
      %75 = arith.mulf %63, %74 : f32
      %c0_30 = arith.constant 0 : index
      %76 = memref.load %arg6[%c0_30] : memref<1xf32, #tpu.memory_space<smem>>
      memref.store %75, %arg6[%c0_30] : memref<1xf32, #tpu.memory_space<smem>>
    } else {
    }
    return
  }
  func.func @transform_0(%arg0: i32) -> i32 {
    %c0_i32 = arith.constant 0 : i32
    %c0_i32_0 = arith.constant 0 : i32
    return %c0_i32 : i32
  }
  func.func @transform_1(%arg0: i32) -> (i32, i32) {
    %c0_i32 = arith.constant 0 : i32
    %c0_i32_0 = arith.constant 0 : i32
    return %arg0, %c0_i32 : i32, i32
  }
  func.func @transform_2(%arg0: i32) -> (i32, i32) {
    %c0_i32 = arith.constant 0 : i32
    %c0_i32_0 = arith.constant 0 : i32
    return %arg0, %c0_i32 : i32, i32
  }
  func.func @transform_3(%arg0: i32) -> (i32, i32) {
    %c0_i32 = arith.constant 0 : i32
    %c0_i32_0 = arith.constant 0 : i32
    return %c0_i32, %arg0 : i32, i32
  }
  func.func @transform_4(%arg0: i32) -> (i32, i32) {
    %c0_i32 = arith.constant 0 : i32
    %c0_i32_0 = arith.constant 0 : i32
    return %c0_i32, %arg0 : i32, i32
  }
  func.func @transform_5(%arg0: i32) -> i32 {
    %c0_i32 = arith.constant 0 : i32
    %c0_i32_0 = arith.constant 0 : i32
    return %c0_i32 : i32
  }
}

</mosaic_0001>

<bundles_post_ra>
// kernel: tpu_custom_call.1
= control target key start
LH: loop header
LB: loop body
LE: loop exit
PB: predicated region body
PF: predicated region fallthrough
CT: control target
= control target key end

     0   :  { %10 = vsyncpa [#allocation5], 0  ;;  %s1380_s0 = inlined_call_operand.vmem [shape: f32[4], index: 0, kind: input, shape index: {}]   ;;  %s1381_s1 = inlined_call_operand.vmem [shape: f32[256,128], index: 1, kind: input, shape index: {}]   ;;  %s1382_s2 = inlined_call_operand.vmem [shape: s32[256,1], index: 2, kind: input, shape index: {}]   ;;  %s1383_s3 = inlined_call_operand.vmem [shape: f32[2,256], index: 3, kind: input, shape index: {}]   ;;  %s1384_s4 = inlined_call_operand.vmem [shape: f32[2,256], index: 4, kind: input, shape index: {}]   ;;  %s1385_s5 = inlined_call_operand.hbm [shape: f32[1], index: 5, kind: output, shape index: {}]  }
   0x1   :  { %11 = vsyncpa [#allocation4], 0  ;;  %s1052_s18 = smov 0  }
   0x2 LB: > { %s1058_s19 = sadd.s32 4294967295, %s1016_s18   ;;  %p845_p0 = scmp.ge.s32.totalorder %s1016_s18, 1  ;;  %s1016_s18 = sphi %s1052_s18, %s17_s18  }
   0x3   : > { %p168_p1 = scmp.lt.s32.totalorder %s1016_s18, 3  ;;  %s181_s22 = sshll.u32 %s1380_s0, 4  ;;  %s182_s22 = int_to_ptr.vmem [resolvable:$true] %s181_s22 }
   0x4   : > { %p893_p3 = scmp.eq.s32.totalorder %s1058_s19, 0  ;;  %s977_s24 = scalar_lea.vmem %s182_s22, 16 }
   0x5   : > { %p1065_p2 = pnand %p845_p0, %p168_p1  ;;  %p978_p6 = scmp.ne.s32.totalorder %s182_s22, %s977_s24 }
   0x6   : > { %p985_p10 = scmp.lt.s32.totalorder %s182_s22, %s182_s22  ;;  %p986_p11 = scmp.lt.s32.totalorder %s977_s24, %s977_s24 }
   0x7   : > { %p889_p4 = pneg %p1065_p2 }
   0x8   : > { %p987_p12 = por %p986_p11, %p985_p10 }
   0x9   : > { %p890_p5 = pnand %p893_p3, %p889_p4 }
   0xb   : > { %p979_p7 = pneg %p890_p5 }
   0xd   : > { %p980_p8 = pnand %p979_p7, %p978_p6 }
   0xf   : > { %p981_p9 = pneg %p980_p8 }
  0x11   : > { %p988_p13 = pnand %p987_p12, %p981_p9 }
  0x13   : > { %991 = shalt.err (!%p988_p13)
}
  0x14   : > { %s1018_s25 = smov [#allocation3]   ;;  %226 = sbr.rel (%p1065_p2) target bundleno = 633 (0x279), region = 40 }
  0x15   : > { %892 = dma.vmem_to_smem (!%p890_p5), %s182_s22, 16, %s1018_s25, [#allocation5]  }
  0x19   : > { %1007 = dma.done.wait (%p893_p3), [#allocation5], 16  }
  0x1a   : > { %1009 = vsyncadd (%p893_p3), [#allocation5], 4294967280 }
  0x1b   : > { %232 = sfence }
  0x1c   : > { %s850_s26 = sshll.u32 %s1058_s19, 4  ;;  %v1019_v0 = vmov 0   ;;  %v485_v50 = vlaneseq  ;;  %p275_p1 = scmp.lt.s32.totalorder %s1058_s19, 1 }
  0x1d   : > { %p264_p0 = scmp.lt.s32.totalorder %s850_s26, 31  ;;  %912 = vset.pattern.permute.xlu1 %v1019_v0  ;;  %911 = vset.pattern.permute.xlu0 %v1019_v0  ;;  %s1020_s17 = smov 0.0  }
  0x1e   : > { %v1248_v57 = vand.u32 127, %v485_v50  ;;  %s276_s9 = scalar_select %p275_p1, %s1058_s19, 1 }
  0x1f   : > { %s1388_s26 = smov (!%p264_p0, %s850_s26), 31  ;;  %880 = sst [smem:[#allocation2]] (%p893_p3), %s1020_s17 }
  0x20   : > { %s851_s27 = sshll.u32 %s1388_s26, 3  ;;  %s854_s10 = sshll.u32 %s276_s9, 1 }
  0x21   : > { %s267_s30 = scalar_lea.vmem %s1381_s1, %s851_s27  ;;  %s1142_s8 = scalar_lea.vmem %s1382_s2, %s851_s27 }
  0x22   : > { %v1089_v1 = vld [vmem:[%s267_s30 + $0x10] sm:$0xff]  ;;  %v1091_v2 = vld [vmem:[%s267_s30] sm:$0xff]  ;;  %v1095_v3 = vld [vmem:[%s267_s30 + $0x18] sm:$0xff]  ;;  %s278_s13 = scalar_lea.vmem %s1383_s3, %s854_s10  ;;  %s282_s16 = scalar_lea.vmem %s1384_s4, %s854_s10 }
  0x23   : > { %329 = vmax.xlane.f32.xlu1 %v1089_v1  ;;  %325 = vmax.xlane.f32.xlu0 %v1091_v2  ;;  %v1097_v4 = vld [vmem:[%s267_s30 + $0x8] sm:$0xff]  ;;  %v1103_v6 = vld [vmem:[%s267_s30 + $0x20] sm:$0xff]  ;;  %v1107_v7 = vld [vmem:[%s267_s30 + $0x38] sm:$0xff]  ;;  %881 = sst [smem:[#allocation2 + $0x1]] (%p893_p3), %s1020_s17  ;;  %p896_p2 = scmp.eq.s32.totalorder %s1058_s19, 1 }
  0x24   : > { %v1101_v5 = vld [vmem:[%s267_s30 + $0x28] sm:$0xff]  ;;  %v1109_v8 = vld [vmem:[%s267_s30 + $0x30] sm:$0xff]  ;;  %v1115_v10 = vld [vmem:[%s267_s30 + $0x40] sm:$0xff]  ;;  %882 = sst [smem:[#allocation2 + $0x2]] (%p893_p3), %s1020_s17  ;;  %s1021_s14 = smov [#allocation6]  }
  0x25   : > { %v1113_v9 = vld [vmem:[%s267_s30 + $0x48] sm:$0xff]  ;;  %v1119_v11 = vld [vmem:[%s267_s30 + $0x58] sm:$0xff]  ;;  %v1121_v12 = vld [vmem:[%s267_s30 + $0x50] sm:$0xff]  ;;  %s615_s20 = sld [smem:[#allocation2]] }
  0x26   : > { %v1125_v13 = vld [vmem:[%s267_s30 + $0x68] sm:$0xff]  ;;  %v1127_v14 = vld [vmem:[%s267_s30 + $0x60] sm:$0xff]  ;;  %v1131_v15 = vld [vmem:[%s267_s30 + $0x78] sm:$0xff]  ;;  %s857_s21 = sld [smem:[#allocation2 + $0x1]] }
  0x27   : > { %331 = vmax.xlane.f32.xlu1 %v1095_v3  ;;  %327 = vmax.xlane.f32.xlu0 %v1097_v4  ;;  %v1133_v16 = vld [vmem:[%s267_s30 + $0x70] sm:$0xff]  ;;  %v1145_v17 = vld [vmem:[%s1142_s8 + $0x8] sm:$0xff]  ;;  %v1152_v19 = vld [vmem:[%s1142_s8] sm:$0xff]  ;;  %s738_s22 = sld [smem:[#allocation3]] }
  0x28   : > { %v1149_v18 = vld [vmem:[%s1142_s8 + $0x10] sm:$0xff]  ;;  %v1157_v20 = vld [vmem:[%s1142_s8 + $0x18] sm:$0xff]  ;;  %v1160_v21 = vld [vmem:[%s1142_s8 + $0x48] sm:$0xff]  ;;  %s862_s23 = sld [smem:[#allocation3 + $0x1]] }
  0x29   : > { %v1165_v22 = vld [vmem:[%s1142_s8 + $0x20] sm:$0xff]  ;;  %v1168_v23 = vld [vmem:[%s1142_s8 + $0x58] sm:$0xff]  ;;  %v1173_v24 = vld [vmem:[%s1142_s8 + $0x28] sm:$0xff]  ;;  %s858_s24 = sld [smem:[#allocation2 + $0x2]] }
  0x2a   : > { %v1176_v25 = vld [vmem:[%s1142_s8 + $0x68] sm:$0xff]  ;;  %v1181_v26 = vld [vmem:[%s1142_s8 + $0x30] sm:$0xff]  ;;  %v1184_v27 = vld [vmem:[%s1142_s8 + $0x78] sm:$0xff]  ;;  %s864_s25 = sld [smem:[#allocation3 + $0x2]] }
  0x2b   : > { %335 = vmax.xlane.f32.xlu1 %v1101_v5  ;;  %333 = vmax.xlane.f32.xlu0 %v1103_v6  ;;  %v1189_v28 = vld [vmem:[%s1142_s8 + $0x38] sm:$0xff]  ;;  %v1193_v29 = vld [vmem:[%s1142_s8 + $0x40] sm:$0xff]  ;;  %v1197_v30 = vld [vmem:[%s1142_s8 + $0x50] sm:$0xff]  ;;  %s860_s27 = sld [smem:[#allocation3 + $0x3]] }
  0x2c   : > { %v1201_v31 = vld [vmem:[%s1142_s8 + $0x60] sm:$0xff]  ;;  %v1205_v32 = vld [vmem:[%s1142_s8 + $0x70] sm:$0xff] }
  0x2f   : > { %339 = vmax.xlane.f32.xlu1 %v1107_v7  ;;  %337 = vmax.xlane.f32.xlu0 %v1109_v8 }
  0x33   : > { %343 = vmax.xlane.f32.xlu1 %v1113_v9  ;;  %341 = vmax.xlane.f32.xlu0 %v1115_v10 }
  0x37   : > { %347 = vmax.xlane.f32.xlu1 %v1119_v11  ;;  %345 = vmax.xlane.f32.xlu0 %v1121_v12 }
  0x3b   : > { %351 = vmax.xlane.f32.xlu1 %v1125_v13  ;;  %349 = vmax.xlane.f32.xlu0 %v1127_v14 }
  0x3f   : > { %355 = vmax.xlane.f32.xlu1 %v1131_v15  ;;  %353 = vmax.xlane.f32.xlu0 %v1133_v16 }
  0x50   : > { %491 = vperm.xlu1 %912, %v1145_v17  }
  0x54   : > { %494 = vperm.xlu1 %912, %v1149_v18  }
  0x55   : > { %488 = vperm.xlu0 %911, %v1152_v19  }
  0x58   : > { %497 = vperm.xlu1 %912, %v1157_v20  }
  0x59   : > { %515 = vperm.xlu0 %911, %v1160_v21  }
  0x5c   : > { %500 = vperm.xlu1 %912, %v1165_v22  }
  0x5d   : > { %521 = vperm.xlu0 %911, %v1168_v23  }
  0x60   : > { %503 = vperm.xlu1 %912, %v1173_v24  }
  0x61   : > { %527 = vperm.xlu0 %911, %v1176_v25  }
  0x64   : > { %506 = vperm.xlu1 %912, %v1181_v26  }
  0x65   : > { %533 = vperm.xlu0 %911, %v1184_v27  }
  0x68   : > { %509 = vperm.xlu1 %912, %v1189_v28  }
  0x6c   : > { %512 = vperm.xlu1 %912, %v1193_v29  }
  0x70   : > { %518 = vperm.xlu1 %912, %v1197_v30  }
  0x74   : > { %524 = vperm.xlu1 %912, %v1201_v31  }
  0x78   : > { %530 = vperm.xlu1 %912, %v1205_v32  }
  0xac   : > { %v1208_v33 = vpop.xlane.xlu1 %329  ;;  %v1210_v34 = vpop.xlane.xlu0 %325 }
  0xad   : > { %v357_v45 = vsub.f32 %v1091_v2, %v1210_v34  ;;  %v359_v52 = vsub.f32 %v1089_v1, %v1208_v33 }
  0xaf   : > { %v373_v48 = vmul.f32 1.442695, %v357_v45  ;;  %v377_v58 = vmul.f32 1.442695, %v359_v52 }
  0xb0   : > { %v1212_v35 = vpop.xlane.xlu1 %331  ;;  %v1214_v36 = vpop.xlane.xlu0 %327 }
  0xb1   : > { %v360_v46 = vsub.f32 %v1095_v3, %v1212_v35  ;;  %v358_v49 = vsub.f32 %v1097_v4, %v1214_v36  ;;  %913 = vpow2.f32 %v373_v48 }
  0xb3   : > { %v379_v53 = vmul.f32 1.442695, %v360_v46  ;;  %v375_v56 = vmul.f32 1.442695, %v358_v49 }
  0xb4   : > { %v1216_v37 = vpop.xlane.xlu1 %335  ;;  %v1218_v38 = vpop.xlane.xlu0 %333 }
  0xb5   : > { %v362_v54 = vsub.f32 %v1101_v5, %v1216_v37  ;;  %915 = vpow2.f32 %v379_v53  ;;  %v361_v60 = vsub.f32 %v1103_v6, %v1218_v38 }
  0xb6   : > { %917 = vpow2.f32 %v375_v56 }
  0xb7   : > { %v383_v59 = vmul.f32 1.442695, %v362_v54  ;;  %919 = vpow2.f32 %v377_v58  ;;  %v381_v45 = vmul.f32 1.442695, %v361_v60 }
  0xb8   : > { %v1220_v39 = vpop.xlane.xlu1 %339  ;;  %v1222_v40 = vpop.xlane.xlu0 %337 }
  0xb9   : > { %v364_v63 = vsub.f32 %v1107_v7, %v1220_v39  ;;  %921 = vpow2.f32 %v383_v59  ;;  %v363_v46 = vsub.f32 %v1109_v8, %v1222_v40 }
  0xba   : > { %923 = vpow2.f32 %v381_v45 }
  0xbb   : > { %v387_v50 = vmul.f32 1.442695, %v364_v63  ;;  %v385_v54 = vmul.f32 1.442695, %v363_v46 }
  0xbc   : > { %v1224_v41 = vpop.xlane.xlu1 %343  ;;  %v1226_v42 = vpop.xlane.xlu0 %341 }
  0xbd   : > { %v366_v52 = vsub.f32 %v1113_v9, %v1224_v41  ;;  %v365_v56 = vsub.f32 %v1115_v10, %v1226_v42  ;;  %925 = vpow2.f32 %v387_v50 }
  0xbe   : > { %927 = vpow2.f32 %v385_v54 }
  0xbf   : > { %v391_v59 = vmul.f32 1.442695, %v366_v52 }
  0xc0   : > { %v1228_v43 = vpop.xlane.xlu1 %347  ;;  %v1230_v44 = vpop.xlane.xlu0 %345 }
  0xc1   : > { %v368_v60 = vsub.f32 %v1119_v11, %v1228_v43  ;;  %v367_v63 = vsub.f32 %v1121_v12, %v1230_v44  ;;  %929 = vpow2.f32 %v391_v59 }
  0xc3   : > { %v395_v45 = vmul.f32 1.442695, %v368_v60 }
  0xc4   : > { %v1236_v47 = vpop.xlane.xlu1 %351  ;;  %v1240_v51 = vpop.xlane.xlu0 %349 }
  0xc5   : > { %v369_v46 = vsub.f32 %v1127_v14, %v1240_v51 }
  0xc8   : > { %v1246_v55 = vpop.xlane.xlu1 %355  ;;  %v1252_v61 = vpop.xlane.xlu0 %353 }
  0xc9   : > { %v371_v59 = vsub.f32 %v1133_v16, %v1252_v61 }
  0xcc   : > { %v492_v62 = vpop.permute.xlu1 %491 }
  0xcd   : > { %vm536_vm0 = vcmp.eq.s32.totalorder %v1248_v57, %v492_v62  ;;  %v914_v62 = vpop.eup %913 }
  0xce   : > { %v552_v0 = vsel %vm536_vm0, %v1097_v4, 0.0  ;;  %vm701_vm0 = vcmask 1040384  }
  0xcf   : > { %569 = vadd.xlane.f32.xlu0 %v552_v0  ;;  %v916_v0 = vpop.eup %915 }
  0xd0   : > { %v495_v48 = vpop.permute.xlu1 %494  ;;  %v489_v49 = vpop.permute.xlu0 %488 }
  0xd1   : > { %vm537_vm1 = vcmp.eq.s32.totalorder %v1248_v57, %v495_v48  ;;  %vm535_vm2 = vcmp.eq.s32.totalorder %v1248_v57, %v489_v49  ;;  %v918_v48 = vpop.eup %917 }
  0xd2   : > { %v553_v53 = vsel %vm537_vm1, %v1089_v1, 0.0  ;;  %v551_v4 = vsel %vm535_vm2, %v1091_v2, 0.0  ;;  %v389_v2 = vmul.f32 1.442695, %v365_v56  ;;  %v920_v50 = vpop.eup %919  ;;  %vm599_vm1 = vcmp.ge.s32.totalorder %v1152_v19, 0 }
  0xd3   : > { %571 = vadd.xlane.f32.xlu0 %v553_v53  ;;  %567 = vadd.xlane.f32.xlu1 %v551_v4  ;;  %v922_v52 = vpop.eup %921  ;;  %v370_v53 = vsub.f32 %v1125_v13, %v1236_v47  ;;  %v397_v4 = vmul.f32 1.442695, %v369_v46  ;;  %vm600_vm2 = vcmp.ge.s32.totalorder %v1145_v17, 0 }
  0xd4   : > { %v498_v58 = vpop.permute.xlu1 %497  ;;  %931 = vpow2.f32 %v389_v2  ;;  %v924_v56 = vpop.eup %923  ;;  %v401_v2 = vmul.f32 1.442695, %v371_v59 }
  0xd5   : > { %vm538_vm3 = vcmp.eq.s32.totalorder %v1248_v57, %v498_v58  ;;  %933 = vpow2.f32 %v395_v45  ;;  %v399_v58 = vmul.f32 1.442695, %v370_v53  ;;  %v926_v60 = vpop.eup %925  ;;  %v516_v59 = vpop.permute.xlu0 %515 }
  0xd6   : > { %v554_v1 = vsel %vm538_vm3, %v1095_v3, 0.0  ;;  %v393_v3 = vmul.f32 1.442695, %v367_v63  ;;  %vm544_vm9 = vcmp.eq.s32.totalorder %v1248_v57, %v516_v59  ;;  %vm648_vm3 = vcmask 7168  }
  0xd7   : > { %573 = vadd.xlane.f32.xlu0 %v554_v1  ;;  %405 = vadd.xlane.f32.xlu1 %v914_v62  ;;  %v928_v62 = vpop.eup %927  ;;  %v372_v1 = vsub.f32 %v1131_v15, %v1246_v55 }
  0xd8   : > { %v501_v49 = vpop.permute.xlu1 %500  ;;  %935 = vpow2.f32 %v393_v3  ;;  %v930_v63 = vpop.eup %929 }
  0xd9   : > { %937 = vpow2.f32 %v397_v4  ;;  %v403_v46 = vmul.f32 1.442695, %v372_v1  ;;  %vm539_vm4 = vcmp.eq.s32.totalorder %v1248_v57, %v501_v49 }
  0xda   : > { %939 = vpow2.f32 %v399_v58 }
  0xdb   : > { %407 = vadd.xlane.f32.xlu0 %v918_v48  ;;  %411 = vadd.xlane.f32.xlu1 %v916_v0  ;;  %941 = vpow2.f32 %v401_v2 }
  0xdc   : > { %v504_v54 = vpop.permute.xlu1 %503  ;;  %943 = vpow2.f32 %v403_v46 }
  0xdd   : > { %vm540_vm5 = vcmp.eq.s32.totalorder %v1248_v57, %v504_v54 }
  0xdf   : > { %409 = vadd.xlane.f32.xlu0 %v920_v50  ;;  %415 = vadd.xlane.f32.xlu1 %v922_v52 }
  0xe0   : > { %v507_v0 = vpop.permute.xlu1 %506 }
  0xe1   : > { %v932_v45 = vpop.eup %931  ;;  %vm541_vm6 = vcmp.eq.s32.totalorder %v1248_v57, %v507_v0  ;;  %v560_v0 = vsel %vm544_vm9, %v1113_v9, 0.0  ;;  %vm606_vm9 = vcmp.ge.s32.totalorder %v1189_v28, 0 }
  0xe2   : > { %v934_v48 = vpop.eup %933  ;;  %v557_v1 = vsel %vm541_vm6, %v1109_v8, 0.0  ;;  %vm603_vm6 = vcmp.ge.s32.totalorder %v1165_v22, 0 }
  0xe3   : > { %413 = vadd.xlane.f32.xlu0 %v924_v56  ;;  %419 = vadd.xlane.f32.xlu1 %v926_v60  ;;  %v555_v56 = vsel %vm539_vm4, %v1103_v6, 0.0  ;;  %v556_v60 = vsel %vm540_vm5, %v1101_v5, 0.0  ;;  %v522_v6 = vpop.permute.xlu0 %521  ;;  %vm601_vm4 = vcmp.ge.s32.totalorder %v1149_v18, 0  ;;  %vm602_vm5 = vcmp.ge.s32.totalorder %v1157_v20, 0 }
  0xe4   : > { %v510_v50 = vpop.permute.xlu1 %509  ;;  %vm546_vm11 = vcmp.eq.s32.totalorder %v1248_v57, %v522_v6 }
  0xe5   : > { %v936_v3 = vpop.eup %935  ;;  %vm542_vm7 = vcmp.eq.s32.totalorder %v1248_v57, %v510_v50 }
  0xe6   : > { %v938_v52 = vpop.eup %937  ;;  %v558_v5 = vsel %vm542_vm7, %v1107_v7, 0.0  ;;  %vm604_vm7 = vcmp.ge.s32.totalorder %v1173_v24, 0 }
  0xe7   : > { %417 = vadd.xlane.f32.xlu0 %v928_v62  ;;  %423 = vadd.xlane.f32.xlu1 %v930_v63  ;;  %v940_v53 = vpop.eup %939  ;;  %v528_v63 = vpop.permute.xlu0 %527 }
  0xe8   : > { %v513_v4 = vpop.permute.xlu1 %512  ;;  %v942_v58 = vpop.eup %941  ;;  %vm548_vm13 = vcmp.eq.s32.totalorder %v1248_v57, %v528_v63 }
  0xe9   : > { %v944_v49 = vpop.eup %943  ;;  %vm543_vm8 = vcmp.eq.s32.totalorder %v1248_v57, %v513_v4  ;;  %v564_v46 = vsel %vm548_vm13, %v1125_v13, 0.0  ;;  %vm610_vm13 = vcmp.ge.s32.totalorder %v1168_v23, 0 }
  0xea   : > { %v559_v2 = vsel %vm543_vm8, %v1115_v10, 0.0  ;;  %vm605_vm8 = vcmp.ge.s32.totalorder %v1181_v26, 0 }
  0xeb   : > { %421 = vadd.xlane.f32.xlu0 %v932_v45  ;;  %427 = vadd.xlane.f32.xlu1 %v934_v48  ;;  %v562_v45 = vsel %vm546_vm11, %v1119_v11, 0.0  ;;  %v534_v9 = vpop.permute.xlu0 %533  ;;  %v692_v11 = vld [vmem:[%s278_s13] sm:$0x3]  ;;  %vm608_vm11 = vcmp.ge.s32.totalorder %v1160_v21, 0 }
  0xec   : > { %v519_v62 = vpop.permute.xlu1 %518  ;;  %vm550_vm15 = vcmp.eq.s32.totalorder %v1248_v57, %v534_v9  ;;  %v696_v13 = vsub.f32 0.0, %v692_v11 }
  0xed   : > { %vm545_vm10 = vcmp.eq.s32.totalorder %v1248_v57, %v519_v62 }
  0xee   : > { %v561_v8 = vsel %vm545_vm10, %v1121_v12, 0.0  ;;  %v697_v48 = vmax.f32 %v696_v13, 0.0  ;;  %vm607_vm10 = vcmp.ge.s32.totalorder %v1193_v29, 0 }
  0xef   : > { %425 = vadd.xlane.f32.xlu0 %v936_v3  ;;  %429 = vadd.xlane.f32.xlu1 %v938_v52 }
  0xf0   : > { %v525_v54 = vpop.permute.xlu1 %524  ;;  %v698_v3 = vmul.f32 10.0, %v697_v48 }
  0xf1   : > { %vm547_vm12 = vcmp.eq.s32.totalorder %v1248_v57, %v525_v54 }
  0xf2   : > { %v563_v10 = vsel %vm547_vm12, %v1127_v14, 0.0  ;;  %v566_v14 = vsel %vm550_vm15, %v1131_v15, 0.0  ;;  %vm609_vm12 = vcmp.ge.s32.totalorder %v1197_v30, 0  ;;  %vm612_vm15 = vcmp.ge.s32.totalorder %v1176_v25, 0 }
  0xf3   : > { %575 = vadd.xlane.f32.xlu0 %v555_v56  ;;  %431 = vadd.xlane.f32.xlu1 %v940_v53 }
  0xf4   : > { %v531_v7 = vpop.permute.xlu1 %530 }
  0xf5   : > { %vm549_vm14 = vcmp.eq.s32.totalorder %v1248_v57, %v531_v7 }
  0xf6   : > { %v565_v12 = vsel %vm549_vm14, %v1133_v16, 0.0  ;;  %v693_v16 = vld [vmem:[%s282_s16] sm:$0x3]  ;;  %vm611_vm14 = vcmp.ge.s32.totalorder %v1201_v31, 0 }
  0xf7   : > { %577 = vadd.xlane.f32.xlu0 %v556_v60  ;;  %433 = vadd.xlane.f32.xlu1 %v942_v58  ;;  %v694_v57 = vsub.f32 %v693_v16, %v692_v11 }
  0xf9   : > { %v695_v50 = vmul.f32 %v694_v57, %v694_v57 }
  0xfb   : > { %579 = vadd.xlane.f32.xlu0 %v557_v1  ;;  %435 = vadd.xlane.f32.xlu1 %v944_v49  ;;  %v699_v52 = vadd.f32 %v698_v3, %v695_v50 }
  0xfd   : > { %v702_v15 = vsel %vm701_vm0, %v699_v52, 0.0  ;;  %v717_v53 = vrot.slane %v699_v52, 1 }
  0xff   : > { %583 = vadd.xlane.f32.xlu0 %v559_v2  ;;  %581 = vadd.xlane.f32.xlu1 %v558_v5  ;;  %v1314_v4 = vsel %vm701_vm0, %v717_v53, 0.0  ;;  %vm613_vm0 = vcmp.ge.s32.totalorder %v1205_v32, 0 }
 0x103   : > { %587 = vadd.xlane.f32.xlu0 %v561_v8  ;;  %585 = vadd.xlane.f32.xlu1 %v560_v0 }
 0x107   : > { %591 = vadd.xlane.f32.xlu0 %v563_v10  ;;  %589 = vadd.xlane.f32.xlu1 %v562_v45 }
 0x10b   : > { %595 = vadd.xlane.f32.xlu0 %v565_v12  ;;  %593 = vadd.xlane.f32.xlu1 %v564_v46 }
 0x10f   : > { %597 = vadd.xlane.f32.xlu1 %v566_v14 }
 0x113   : > { %703 = vadd.xlane.f32.xlu1 %v702_v15 }
 0x158   : > { %v570_v56 = vpop.xlane.xlu0 %569 }
 0x15c   : > { %v568_v58 = vpop.xlane.xlu1 %567  ;;  %v572_v59 = vpop.xlane.xlu0 %571 }
 0x160   : > { %v406_v60 = vpop.xlane.xlu1 %405  ;;  %v574_v62 = vpop.xlane.xlu0 %573 }
 0x161   : > { %945 = vlog2.f32 %v406_v60 }
 0x164   : > { %v412_v49 = vpop.xlane.xlu1 %411  ;;  %v408_v1 = vpop.xlane.xlu0 %407 }
 0x165   : > { %947 = vlog2.f32 %v412_v49 }
 0x166   : > { %949 = vlog2.f32 %v408_v1 }
 0x168   : > { %v416_v6 = vpop.xlane.xlu1 %415  ;;  %v410_v54 = vpop.xlane.xlu0 %409 }
 0x169   : > { %951 = vlog2.f32 %v410_v54 }
 0x16a   : > { %953 = vlog2.f32 %v416_v6 }
 0x16c   : > { %v420_v2 = vpop.xlane.xlu1 %419  ;;  %v414_v5 = vpop.xlane.xlu0 %413 }
 0x16d   : > { %955 = vlog2.f32 %v414_v5 }
 0x16e   : > { %v946_v63 = vpop.eup %945 }
 0x16f   : > { %v438_v8 = vmul.f32 0.6931472, %v946_v63 }
 0x170   : > { %v424_v0 = vpop.xlane.xlu1 %423  ;;  %v418_v7 = vpop.xlane.xlu0 %417 }
 0x171   : > { %v469_v10 = vadd.f32 %v438_v8, %v1210_v34  ;;  %957 = vlog2.f32 %v418_v7 }
 0x172   : > { %v948_v45 = vpop.eup %947  ;;  %959 = vlog2.f32 %v420_v2 }
 0x173   : > { %v950_v9 = vpop.eup %949  ;;  %v444_v12 = vmul.f32 0.6931472, %v948_v45  ;;  %v616_v46 = vsub.f32 %v469_v10, %v568_v58 }
 0x174   : > { %v440_v14 = vmul.f32 0.6931472, %v950_v9  ;;  %v428_v11 = vpop.xlane.xlu1 %427  ;;  %v422_v13 = vpop.xlane.xlu0 %421 }
 0x175   : > { %v472_v16 = vadd.f32 %v444_v12, %v1212_v35  ;;  %961 = vlog2.f32 %v422_v13  ;;  %v632_v50 = vsel %vm599_vm1, %v616_v46, 0.0  ;;  %vm614_vm1 = vcmp.ge.s32.totalorder %v1184_v27, 0 }
 0x176   : > { %v470_v57 = vadd.f32 %v440_v14, %v1214_v36  ;;  %v952_v48 = vpop.eup %951  ;;  %963 = vlog2.f32 %v424_v0  ;;  %v649_v17 = vsel %vm648_vm3, %v632_v50, 0.0 }
 0x177   : > { %v954_v34 = vpop.eup %953  ;;  %v442_v52 = vmul.f32 0.6931472, %v952_v48  ;;  %965 = vlog2.f32 %v428_v11  ;;  %v619_v19 = vsub.f32 %v472_v16, %v574_v62 }
 0x178   : > { %v617_v3 = vsub.f32 %v470_v57, %v570_v56  ;;  %v430_v15 = vpop.xlane.xlu1 %429  ;;  %v426_v53 = vpop.xlane.xlu0 %425  ;;  %v448_v56 = vmul.f32 0.6931472, %v954_v34 }
 0x179   : > { %967 = vlog2.f32 %v430_v15  ;;  %v471_v36 = vadd.f32 %v442_v52, %v1208_v33  ;;  %v635_v5 = vsel %vm602_vm5, %v619_v19, 0.0 }
 0x17a   : > { %v633_v35 = vsel %vm600_vm2, %v617_v3, 0.0  ;;  %969 = vlog2.f32 %v426_v53  ;;  %v956_v58 = vpop.eup %955  ;;  %v474_v8 = vadd.f32 %v448_v56, %v1216_v37  ;;  %v654_v9 = vsel %vm648_vm3, %v635_v5, 0.0 }
 0x17b   : > { %v650_v60 = vsel %vm648_vm3, %v633_v35, 0.0  ;;  %v618_v49 = vsub.f32 %v471_v36, %v572_v59  ;;  %v446_v1 = vmul.f32 0.6931472, %v956_v58 }
 0x17c   : > { %v432_v6 = vpop.xlane.xlu1 %431  ;;  %v651_v54 = vadd.f32 %v650_v60, %v649_v17  ;;  %v576_v2 = vpop.xlane.xlu0 %575 }
 0x17d   : > { %v634_v62 = vsel %vm601_vm4, %v618_v49, 0.0  ;;  %971 = vlog2.f32 %v432_v6  ;;  %v473_v33 = vadd.f32 %v446_v1, %v1218_v38 }
 0x17e   : > { %v958_v63 = vpop.eup %957  ;;  %v652_v20 = vsel %vm648_vm3, %v634_v62, 0.0 }
 0x17f   : > { %v960_v0 = vpop.eup %959  ;;  %v450_v59 = vmul.f32 0.6931472, %v958_v63  ;;  %v653_v7 = vadd.f32 %v652_v20, %v651_v54  ;;  %v620_v10 = vsub.f32 %v473_v33, %v576_v2 }
 0x180   : > { %v434_v45 = vpop.xlane.xlu1 %433  ;;  %v578_v18 = vpop.xlane.xlu0 %577  ;;  %v452_v22 = vmul.f32 0.6931472, %v960_v0 }
 0x181   : > { %973 = vlog2.f32 %v434_v45  ;;  %v621_v38 = vsub.f32 %v474_v8, %v578_v18  ;;  %v655_v12 = vadd.f32 %v654_v9, %v653_v7  ;;  %v636_v46 = vsel %vm603_vm6, %v620_v10, 0.0 }
 0x182   : > { %v962_v14 = vpop.eup %961  ;;  %v656_v11 = vsel %vm648_vm3, %v636_v46, 0.0  ;;  %v475_v37 = vadd.f32 %v450_v59, %v1222_v40  ;;  %v476_v58 = vadd.f32 %v452_v22, %v1220_v39 }
 0x183   : > { %v637_v13 = vsel %vm604_vm7, %v621_v38, 0.0  ;;  %v964_v16 = vpop.eup %963  ;;  %v454_v24 = vmul.f32 0.6931472, %v962_v14  ;;  %v657_v57 = vadd.f32 %v656_v11, %v655_v12 }
 0x184   : > { %v658_v48 = vsel %vm648_vm3, %v637_v13, 0.0  ;;  %v436_v34 = vpop.xlane.xlu1 %435  ;;  %v580_v50 = vpop.xlane.xlu0 %579  ;;  %v456_v35 = vmul.f32 0.6931472, %v964_v16 }
 0x185   : > { %v966_v3 = vpop.eup %965  ;;  %975 = vlog2.f32 %v436_v34  ;;  %v622_v52 = vsub.f32 %v475_v37, %v580_v50  ;;  %v659_v53 = vadd.f32 %v658_v48, %v657_v57  ;;  %v477_v40 = vadd.f32 %v454_v24, %v1226_v42 }
 0x186   : > { %v968_v15 = vpop.eup %967  ;;  %v460_v54 = vmul.f32 0.6931472, %v966_v3  ;;  %v478_v39 = vadd.f32 %v456_v35, %v1224_v41 }
 0x187   : > { %v970_v19 = vpop.eup %969  ;;  %v638_v36 = vsel %vm605_vm8, %v622_v52, 0.0  ;;  %v462_v2 = vmul.f32 0.6931472, %v968_v15 }
 0x188   : > { %v458_v26 = vmul.f32 0.6931472, %v970_v19  ;;  %v660_v17 = vsel %vm648_vm3, %v638_v36, 0.0  ;;  %v582_v60 = vpop.xlane.xlu1 %581  ;;  %v584_v56 = vpop.xlane.xlu0 %583  ;;  %v480_v45 = vadd.f32 %v460_v54, %v1228_v43 }
 0x189   : > { %v661_v49 = vadd.f32 %v660_v17, %v659_v53  ;;  %v623_v1 = vsub.f32 %v476_v58, %v582_v60  ;;  %v624_v6 = vsub.f32 %v477_v40, %v584_v56  ;;  %v481_v41 = vadd.f32 %v462_v2, %v1240_v51 }
 0x18a   : > { %v972_v62 = vpop.eup %971  ;;  %v479_v42 = vadd.f32 %v458_v26, %v1230_v44 }
 0x18b   : > { %v639_v33 = vsel %vm606_vm9, %v623_v1, 0.0  ;;  %v640_v5 = vsel %vm607_vm10, %v624_v6, 0.0  ;;  %v464_v7 = vmul.f32 0.6931472, %v972_v62 }
 0x18c   : > { %v662_v28 = vsel %vm648_vm3, %v639_v33, 0.0  ;;  %v586_v29 = vpop.xlane.xlu1 %585  ;;  %v588_v63 = vpop.xlane.xlu0 %587  ;;  %v664_v10 = vsel %vm648_vm3, %v640_v5, 0.0 }
 0x18d   : > { %v663_v20 = vadd.f32 %v662_v28, %v661_v49  ;;  %v625_v8 = vsub.f32 %v478_v39, %v586_v29  ;;  %v626_v0 = vsub.f32 %v479_v42, %v588_v63  ;;  %v482_v51 = vadd.f32 %v464_v7, %v1236_v47 }
 0x18e   : > { %v974_v59 = vpop.eup %973 }
 0x18f   : > { %v466_v44 = vmul.f32 0.6931472, %v974_v59  ;;  %v665_v18 = vadd.f32 %v664_v10, %v663_v20  ;;  %v641_v21 = vsel %vm608_vm11, %v625_v8, 0.0  ;;  %v642_v9 = vsel %vm609_vm12, %v626_v0, 0.0 }
 0x190   : > { %v666_v30 = vsel %vm648_vm3, %v641_v21, 0.0  ;;  %v590_v38 = vpop.xlane.xlu1 %589  ;;  %v592_v12 = vpop.xlane.xlu0 %591  ;;  %v668_v43 = vsel %vm648_vm3, %v642_v9, 0.0 }
 0x191   : > { %v667_v46 = vadd.f32 %v666_v30, %v665_v18  ;;  %v627_v14 = vsub.f32 %v480_v45, %v590_v38  ;;  %v628_v22 = vsub.f32 %v481_v41, %v592_v12  ;;  %v483_v13 = vadd.f32 %v466_v44, %v1252_v61 }
 0x192   : > { %v976_v11 = vpop.eup %975 }
 0x193   : > { %v468_v37 = vmul.f32 0.6931472, %v976_v11  ;;  %v669_v16 = vadd.f32 %v668_v43, %v667_v46  ;;  %v643_v24 = vsel %vm610_vm13, %v627_v14, 0.0  ;;  %v644_v23 = vsel %vm611_vm14, %v628_v22, 0.0 }
 0x194   : > { %v670_v31 = vsel %vm648_vm3, %v643_v24, 0.0  ;;  %v594_v57 = vpop.xlane.xlu1 %593  ;;  %v596_v48 = vpop.xlane.xlu0 %595  ;;  %v672_v52 = vsel %vm648_vm3, %v644_v23, 0.0 }
 0x195   : > { %v671_v34 = vadd.f32 %v670_v31, %v669_v16  ;;  %v629_v50 = vsub.f32 %v482_v51, %v594_v57  ;;  %v630_v3 = vsub.f32 %v483_v13, %v596_v48  ;;  %v484_v53 = vadd.f32 %v468_v37, %v1246_v55 }
 0x197   : > { %v673_v47 = vadd.f32 %v672_v52, %v671_v34  ;;  %v645_v15 = vsel %vm612_vm15, %v629_v50, 0.0  ;;  %v646_v61 = vsel %vm613_vm0, %v630_v3, 0.0 }
 0x198   : > { %v674_v25 = vsel %vm648_vm3, %v645_v15, 0.0  ;;  %v598_v32 = vpop.xlane.xlu1 %597  ;;  %v676_v36 = vsel %vm648_vm3, %v646_v61, 0.0 }
 0x199   : > { %v675_v19 = vadd.f32 %v674_v25, %v673_v47  ;;  %v631_v35 = vsub.f32 %v484_v53, %v598_v32 }
 0x19b   : > { %v647_v58 = vsel %vm614_vm1, %v631_v35, 0.0  ;;  %v677_v40 = vadd.f32 %v676_v36, %v675_v19 }
 0x19c   : > { %v678_v26 = vsel %vm648_vm3, %v647_v58, 0.0  ;;  %v704_v27 = vpop.xlane.xlu1 %703 }
 0x19d   : > { %v679_v17 = vadd.f32 %v678_v26, %v677_v40  ;;  %v705_v55 = vrot.slane %v704_v27, 4 }
 0x19f   : > { %680 = vadd.xlane.f32.xlu0 %v679_v17  ;;  %v706_v60 = vadd.f32 %v705_v55, %v704_v27 }
 0x1a1   : > { %v707_v56 = vrot.slane %v706_v60, 2 }
 0x1a3   : > { %720 = vadd.xlane.f32.xlu0 %v1314_v4  ;;  %v708_v54 = vadd.f32 %v707_v56, %v706_v60 }
 0x1a5   : > { %v709_v39 = vrot.slane %v708_v54, 1 }
 0x1a7   : > { %v710_v20 = vadd.f32 %v709_v39, %v708_v54 }
 0x228   : > { %v681_v49 = vpop.xlane.xlu0 %680 }
 0x229   : > { %v682_v1 = vrot.slane %v681_v49, 4 }
 0x22b   : > { %v683_v6 = vadd.f32 %v682_v1, %v681_v49 }
 0x22c   : > { %v721_v2 = vpop.xlane.xlu0 %720 }
 0x22d   : > { %v684_v62 = vrot.slane %v683_v6, 2  ;;  %v722_v33 = vrot.slane %v721_v2, 4 }
 0x22f   : > { %v723_v5 = vadd.f32 %v722_v33, %v721_v2  ;;  %v685_v4 = vadd.f32 %v684_v62, %v683_v6 }
 0x231   : > { %v724_v42 = vrot.slane %v723_v5, 2  ;;  %v686_v28 = vrot.slane %v685_v4, 1 }
 0x233   : > { %v725_v29 = vadd.f32 %v724_v42, %v723_v5  ;;  %v687_v63 = vadd.f32 %v686_v28, %v685_v4 }
 0x235   : > { %869 = vpush %v687_v63  ;;  %v726_v8 = vrot.slane %v725_v29, 1 }
 0x236   : > { %871 = vpush %v710_v20 }
 0x237   : > { %v727_v0 = vadd.f32 %v726_v8, %v725_v29 }
 0x239   : > { %873 = vpush %v727_v0 }
 0x266   : > { %s870_s26 = spop %869 }
 0x267   : > { %s689_s28 = sadd.f32 %s870_s26, %s615_s20  ;;  %s872_s29 = spop %871 }
 0x268   : > { %s712_s30 = sadd.f32 %s872_s29, %s857_s21 }
 0x269   : > { %691 = sst [smem:[#allocation2]] %s689_s28  ;;  %s739_s6 = smul.f32 %s738_s22, %s689_s28 }
 0x26a   : > { %714 = sst [smem:[#allocation2 + $0x1]] %s712_s30  ;;  %s874_s7 = spop %873 }
 0x26b   : > { %s729_s8 = sadd.f32 %s874_s7, %s858_s24  ;;  %s742_s9 = smul.f32 %s862_s23, %s712_s30 }
 0x26d   : > { %731 = sst [smem:[#allocation2 + $0x2]] %s729_s8  ;;  %s746_s10 = smul.f32 %s864_s25, %s729_s8 }
 0x26e   : > { %s743_s11 = sadd.f32 %s742_s9, %s739_s6 }
 0x270   : > { %s747_s12 = sadd.f32 %s746_s10, %s743_s11 }
 0x272   : > { %s748_s13 = smul.f32 %s860_s27, %s747_s12 }
 0x274   : > { %884 = sst [smem:[#allocation6]] (%p896_p2), %s748_s13 }
 0x275   : > { %886 = dma.smem_to_hbm (%p896_p2), %s1021_s14, 16, %s1385_s5, [#allocation4]  }
 0x276   : > { %1011 = dma.done.wait (%p896_p2), [#allocation4], 16  }
 0x277   : > { %1013 = vsyncadd (%p896_p2), [#allocation4], 4294967280 }
 0x278   : > { %764 = sfence }
 0x279 PF: > { %s17_s18 = sadd.s32 1, %s1016_s18  }
 0x27a   : > { %p14_p3 = scmp.ge.s32.totalorder %s17_s18, 4  }
 0x27c   :  { %16 = sbr.rel (!%p14_p3) target bundleno = 2 (0x2), region = 96 }
 0x281   :  { %770 = vsyncpa [#allocation4], 1 }
 0x282   :  { %772 = vsyncpa [#allocation4 + $0x1], 1 }
 0x283   :  { %773 = vsyncpa [#allocation5], 1 }
 0x284   :  { %775 = vsyncpa [#allocation5 + $0x1], 1 }

</bundles_post_ra>
